<compile_context>
chip_gen: v7x
topology: tpu7x:2x2x1
jax: 0.10.0
libtpu: 0.0.40
codegen_flags: <defaults>
</compile_context>

<pallas_src>
import math

import jax
import jax.numpy as jnp
from jax.experimental import pallas as pl
from jax.experimental.pallas import tpu as pltpu


# ----------------------------------------------------------------------------
# Pallas kernels
# ----------------------------------------------------------------------------

def _extract_params_kernel(feat_ref, w1t_ref, b1_ref, wht_ref, bh_ref, out_ref):
    """fc1 -> LeakyReLU(0.2) -> fused (fc_filter | fc_mask) head.

    Weights are pre-transposed, the two heads pre-concatenated, and the fused
    output zero-padded to 128 lanes, so the kernel is two MXU matmuls and one
    lane-dense output store.
    """
    h = jnp.dot(feat_ref[...], w1t_ref[...],
                preferred_element_type=jnp.float32) + b1_ref[...]
    h = jnp.maximum(h, 0.2 * h)                                # LeakyReLU(0.2)
    out = jnp.dot(h, wht_ref[...],
                  preferred_element_type=jnp.float32) + bh_ref[...]
    out_ref[...] = out.astype(out_ref.dtype)


def _clip_kernel(x_ref, out_ref):
    """out = clip(x, 0, 1).  Used when the mask is the constant ones tensor."""
    out_ref[...] = jnp.clip(x_ref[...], 0.0, 1.0).astype(out_ref.dtype)


def _lerp_clip_kernel(img_ref, proc_ref, mask_ref, out_ref):
    """out = clip((1-m)*img + m*proc, 0, 1) with scalar mask m (SMEM)."""
    m = mask_ref[0, 0]
    out = jnp.clip((1.0 - m) * img_ref[...] + m * proc_ref[...], 0.0, 1.0)
    out_ref[...] = out.astype(out_ref.dtype)


# ----------------------------------------------------------------------------
# Tiling / config helpers
# ----------------------------------------------------------------------------

_VMEM = pl.BlockSpec(memory_space=pltpu.MemorySpace.VMEM)
_PREFERRED_COLS = (2048, 1024, 512, 256, 128)


def _round_up(x, m):
    return ((x + m - 1) // m) * m


def _detect_tpu_generation():
    try:
        kind = jax.devices()[0].device_kind.lower()
    except Exception:
        return "unknown"
    if "v7" in kind or "7x" in kind:
        return "v7"
    if "v6" in kind:
        return "v6"
    if "v5" in kind:
        return "v5"
    return "unknown"


_TPU_GEN = _detect_tpu_generation()


def _elemwise_config(n_streams):
    """(max_block_rows, max_block_cols, vmem_limit_bytes) per TPU generation.

    Footprints (double-buffered, 2048-wide f32 tiles):
      v6e: clip 1024 rows -> 2*2*8 = 32 MiB, lerp 512 rows -> 3*2*4 = 24 MiB
           (128 MiB physical; 64 MiB scoped limit)
      v7x: 512 rows       -> clip 16 MiB, lerp 24 MiB (64 MiB physical; 32 MiB)
      v5e/unknown: 256    -> clip  8 MiB, lerp 12 MiB (explicit 32 MiB limit
           overrides v5e's 16 MiB scoped default, which the 12 MiB needs)
    """
    if _TPU_GEN == "v6":
        rows = 1024 if n_streams <= 2 else 512
        return rows, 2048, 64 * 1024 * 1024
    if _TPU_GEN == "v7":
        return 512, 2048, 32 * 1024 * 1024
    return 256, 2048, 32 * 1024 * 1024


def _as_2d_slab(x):
    """Reshape an NCHW image to a lane-dense 2-D slab.

    Free (no-copy) when some preferred column count divides the element count;
    otherwise pads ONCE to a multiple of 512 so output stores are never masked
    vst.msk.  Returns (slab, original_element_count).
    """
    total = x.size
    flat = x.reshape(-1)
    for cols in _PREFERRED_COLS:
        if total % cols == 0:
            return flat.reshape(total // cols, cols), total
    cols = 512
    padded = _round_up(total, cols)
    flat = jnp.pad(flat, (0, padded - total))
    return flat.reshape(padded // cols, cols), total


def _elemwise_tiling(rows, cols, max_rows, max_cols):
    br = min(max_rows, _round_up(rows, 8))          # multiple of 8 (sublane)
    bc = min(max_cols, _round_up(cols, 128))        # multiple of 128 (lane)
    # v7x megacore: ensure the (parallel) row axis has >= 2 blocks when there
    # is enough work, so the memory-bound stream splits across both TCs.
    if _TPU_GEN == "v7" and pl.cdiv(rows, br) == 1 and rows > 1024:
        br = min(br, _round_up(pl.cdiv(rows, 2), 8))
    grid = (pl.cdiv(rows, br), pl.cdiv(cols, bc))
    return br, bc, grid


def _unslab(out2d, total, shape):
    return out2d.reshape(-1)[:total].reshape(shape)


# ----------------------------------------------------------------------------
# Wrappers
# ----------------------------------------------------------------------------

def clip_pallas(img):
    """clip(img, 0, 1) over an NCHW image, tiled + double-buffered."""
    x2d, total = _as_2d_slab(img)
    rows, cols = x2d.shape
    max_rows, max_cols, vmem_limit = _elemwise_config(n_streams=2)
    br, bc, grid = _elemwise_tiling(rows, cols, max_rows, max_cols)
    n = rows * cols
    itemsize = jnp.dtype(img.dtype).itemsize
    out = pl.pallas_call(
        _clip_kernel,
        out_shape=jax.ShapeDtypeStruct((rows, cols), img.dtype),
        grid=grid,
        in_specs=[pl.BlockSpec((br, bc), lambda i, j: (i, j))],
        out_specs=pl.BlockSpec((br, bc), lambda i, j: (i, j)),
        compiler_params=pltpu.CompilerParams(
            dimension_semantics=("parallel", "parallel"),
            vmem_limit_bytes=vmem_limit),
        cost_estimate=pl.CostEstimate(
            flops=2 * n, transcendentals=0, bytes_accessed=2 * n * itemsize),
    )(x2d)
    return _unslab(out, total, img.shape)


def lerp_clip_pallas(img, processed, mask_scalar):
    """clip(lerp(img, processed, m), 0, 1) with a broadcast scalar mask.

    img, processed: (N, C, H, W).  mask_scalar: (1, 1, 1, 1).
    """
    x2d, total = _as_2d_slab(img)
    p2d, _ = _as_2d_slab(processed)
    rows, cols = x2d.shape
    max_rows, max_cols, vmem_limit = _elemwise_config(n_streams=3)
    br, bc, grid = _elemwise_tiling(rows, cols, max_rows, max_cols)
    m2d = mask_scalar.reshape(1, 1).astype(jnp.float32)
    n = rows * cols
    itemsize = jnp.dtype(img.dtype).itemsize
    # TODO(synk): sweep pipeline_mode=pl.Buffered(3) on the two tensor inputs
    # at the 2 MiB tile size (v5e) to hide DMA bubbles at tile boundaries.
    out = pl.pallas_call(
        _lerp_clip_kernel,
        out_shape=jax.ShapeDtypeStruct((rows, cols), img.dtype),
        grid=grid,
        in_specs=[
            pl.BlockSpec((br, bc), lambda i, j: (i, j)),
            pl.BlockSpec((br, bc), lambda i, j: (i, j)),
            pl.BlockSpec((1, 1), lambda i, j: (0, 0),
                         memory_space=pltpu.MemorySpace.SMEM),
        ],
        out_specs=pl.BlockSpec((br, bc), lambda i, j: (i, j)),
        compiler_params=pltpu.CompilerParams(
            dimension_semantics=("parallel", "parallel"),
            vmem_limit_bytes=vmem_limit),
        cost_estimate=pl.CostEstimate(
            flops=5 * n, transcendentals=0, bytes_accessed=3 * n * itemsize),
    )(x2d, p2d, m2d)
    return _unslab(out, total, img.shape)


def extract_parameters_pallas(features, w1t, b1, wht, bh):
    """features: (B, D); w1t: (D, fc1); wht: (fc1, 128-padded fused head)."""
    B = features.shape[0]
    n_out = wht.shape[1]
    # TODO(synk): microsecond-scale whole-array VMEM kernel (B=2, 32x32x128);
    # add a 128-row "parallel" batch grid if B ever grows large.
    return pl.pallas_call(
        _extract_params_kernel,
        out_shape=jax.ShapeDtypeStruct((B, n_out), jnp.float32),
        in_specs=[_VMEM] * 5,
        out_specs=_VMEM,
    )(features, w1t, b1, wht, bh)


# ----------------------------------------------------------------------------
# Module port
# ----------------------------------------------------------------------------

class Cfg:
    feature_extractor_dims = 32
    fc1_size = 32
    filter_param_noise_std = 0.0
    use_param_noise_schedule = False
    maximum_sharpness = 1.0
    minimum_strength = 0.3


def _linear_init(key, out_dim, in_dim):
    """Deterministic nn.Linear-style init: U(-1/sqrt(in), 1/sqrt(in))."""
    kw, kb = jax.random.split(key)
    bound = 1.0 / math.sqrt(in_dim)
    w = jax.random.uniform(kw, (out_dim, in_dim), jnp.float32, -bound, bound)
    b = jax.random.uniform(kb, (out_dim,), jnp.float32, -bound, bound)
    return w, b


class Filter:
    def __init__(self, cfg, short_name, num_filter_parameters, predict=False):
        self.cfg = cfg
        self.channels = 3
        self.num_filter_parameters = num_filter_parameters
        self.range_l = 0
        self.range_r = 1
        self.short_name = short_name
        self.predict = predict
        if predict:
            k = jax.random.PRNGKey(42)
            k1, k2, k3 = jax.random.split(k, 3)
            self.w_fc1, self.b_fc1 = _linear_init(
                k1, cfg.fc1_size, cfg.feature_extractor_dims)
            self.w_filter, self.b_filter = _linear_init(
                k2, self.get_num_filter_parameters(), cfg.fc1_size)
            self.w_mask, self.b_mask = _linear_init(
                k3, self.get_num_mask_parameters(), cfg.fc1_size)
            # Pre-transpose fc1, pre-concatenate the two heads, and zero-pad
            # the fused head to 128 output lanes ONCE.  The per-call Pallas
            # kernel then performs only lane-dense stores and receives
            # ready-to-use operands (no per-call transpose/concat HLOs in
            # front of a microsecond-scale call).
            n_out = (self.get_num_filter_parameters()
                     + self.get_num_mask_parameters())
            self._n_out = n_out
            n_out_pad = max(128, _round_up(n_out, 128))
            self.w1t = jnp.asarray(self.w_fc1.T)                       # (D, fc1)
            self.b1 = jnp.asarray(self.b_fc1[None, :])                 # (1, fc1)
            wht = jnp.concatenate([self.w_filter.T, self.w_mask.T], axis=1)
            bh = jnp.concatenate([self.b_filter, self.b_mask])[None, :]
            self.wht = jnp.pad(wht, ((0, 0), (0, n_out_pad - n_out)))  # (fc1, 128)
            self.bh = jnp.pad(bh, ((0, 0), (0, n_out_pad - n_out)))    # (1, 128)

    # ---- metadata -----------------------------------------------------------
    def get_short_name(self):
        assert self.short_name
        return self.short_name

    def get_num_filter_parameters(self):
        assert self.num_filter_parameters
        return self.num_filter_parameters

    def get_num_mask_parameters(self):
        return 6

    def use_masking(self):
        return False

    def no_high_res(self):
        return False

    def debug_info_batched(self):
        return False

    # ---- compute ------------------------------------------------------------
    def extract_parameters(self, features):
        fused = extract_parameters_pallas(
            features, self.w1t, self.b1, self.wht, self.bh)
        nf = self.get_num_filter_parameters()
        return fused[:, :nf], fused[:, nf:self._n_out]

    def filter_param_regressor(self, features):
        assert False  # abstract in the base class

    def process(self, img, param):
        # TODO(synk): base-class Filter.process raises NotImplementedError;
        # identity placeholder used so the lerp/clip hot path runs.
        return img

    def get_mask(self, img, mask_parameters=None):
        if not self.use_masking():
            return jnp.ones((1, 1, 1, 1), dtype=jnp.float32)
        # TODO(synk): masking branch is dead code for the base class
        # (use_masking() returns False) and is not implemented here.
        raise NotImplementedError

    def forward(self, img, img_features=None, specified_parameter=None,
                high_res=None, inject_noise=False, steps_batch=None):
        if self.predict:
            assert (img_features is None) ^ (specified_parameter is None)
        if img_features is not None:
            filter_features, mask_parameters = self.extract_parameters(img_features)
            filter_parameters = self.filter_param_regressor(filter_features)
        else:
            assert not self.use_masking()
            filter_parameters = specified_parameter
            mask_parameters = jnp.zeros(
                (1, self.get_num_mask_parameters()), dtype=jnp.float32)

        if inject_noise and self.cfg.filter_param_noise_std != 0:
            # base-class config has noise_std == 0; branch not taken here
            pass

        debug_info = {}
        if self.debug_info_batched():
            debug_info['filter_parameters'] = filter_parameters
        else:
            debug_info['filter_parameters'] = filter_parameters[0]
            debug_info['filter_parameters_batch'] = filter_parameters

        self.mask_parameters = mask_parameters
        self.mask = self.get_mask(img, mask_parameters)
        debug_info['mask'] = self.mask[0]

        processed = self.process(img, filter_parameters)
        if self.use_masking():
            # General path: per-call scalar-broadcast mask.
            low_res_output = lerp_clip_pallas(img, processed, self.mask)
        else:
            # Base class: mask is the constant ones tensor, so
            # lerp(img, processed, 1) == processed.  Stream only one array
            # (bandwidth-bound kernel: ~1/3 fewer HBM bytes).
            low_res_output = clip_pallas(processed)

        high_res_output = None  # high_res path not exercised
        return low_res_output, high_res_output, debug_info


# ----------------------------------------------------------------------------
# main
# ----------------------------------------------------------------------------

if __name__ == "__main__":
    cfg = Cfg()
    filt = Filter(cfg, short_name="F", num_filter_parameters=3, predict=True)

    key = jax.random.PRNGKey(0)
    k_img, k_feat, k_param, k_proc, k_odd = jax.random.split(key, 5)

    img = jax.random.uniform(k_img, (2, 3, 16, 16), dtype=jnp.float32)
    img_features = jax.random.normal(
        k_feat, (2, cfg.feature_extractor_dims), dtype=jnp.float32)
    specified_parameter = jax.random.uniform(
        k_param, (2, 3), dtype=jnp.float32)

    # matmul hot path: fc1 -> LeakyReLU -> fused (fc_filter | fc_mask)
    filter_feats, mask_params = filt.extract_parameters(img_features)

    # pure-JAX reference for the fc path
    h_ref = img_features @ filt.w_fc1.T + filt.b_fc1
    h_ref = jnp.where(h_ref >= 0.0, h_ref, 0.2 * h_ref)
    filt_ref = h_ref @ filt.w_filter.T + filt.b_filter
    maskp_ref = h_ref @ filt.w_mask.T + filt.b_mask

    # forward pass (specified_parameter path of the base class)
    low_res, high_res, dbg = filt.forward(
        img, specified_parameter=specified_parameter)

    # general scalar-mask lerp/clip kernel (used by masked subclasses)
    proc = jax.random.uniform(k_proc, img.shape, dtype=jnp.float32) * 1.5 - 0.25
    m = jnp.full((1, 1, 1, 1), 0.5, dtype=jnp.float32)
    lerped = lerp_clip_pallas(img, proc, m)
    lerp_ref = jnp.clip(0.5 * img + 0.5 * proc, 0.0, 1.0)

    # non-multiple-of-128 element count exercises the padded (lane-dense) path
    img_odd = jax.random.uniform(k_odd, (1, 3, 5, 7), dtype=jnp.float32) * 1.5 - 0.25
    clipped_odd = clip_pallas(img_odd)
    clipped_odd_ref = jnp.clip(img_odd, 0.0, 1.0)

    jax.block_until_ready(
        (filter_feats, mask_params, low_res, lerped, clipped_odd))

    assert filter_feats.shape == (2, 3)
    assert mask_params.shape == (2, 6)
    assert low_res.shape == (2, 3, 16, 16)
    assert high_res is None
    assert clipped_odd.shape == (1, 3, 5, 7)
    assert jnp.allclose(filter_feats, filt_ref, atol=1e-3, rtol=1e-3)
    assert jnp.allclose(mask_params, maskp_ref, atol=1e-3, rtol=1e-3)
    assert jnp.allclose(low_res, jnp.clip(img, 0.0, 1.0), atol=1e-6)
    assert jnp.allclose(lerped, lerp_ref, atol=1e-5)
    assert jnp.allclose(clipped_odd, clipped_odd_ref, atol=1e-6)

    print("KERNEL_OK")
</pallas_src>

<mosaic_0001>
module attributes {stable_mosaic.version = 11 : i64} {
  func.func @_extract_params_kernel(%arg0: memref<2x32xf32, #tpu.memory_space<vmem>>, %arg1: memref<32x32xf32, #tpu.memory_space<vmem>>, %arg2: memref<1x32xf32, #tpu.memory_space<vmem>>, %arg3: memref<32x128xf32, #tpu.memory_space<vmem>>, %arg4: memref<1x128xf32, #tpu.memory_space<vmem>>, %arg5: memref<2x128xf32, #tpu.memory_space<vmem>>) attributes {dimension_semantics = [], scalar_prefetch = 0 : i64, scratch_operands = 0 : i64, tpu.core_type = #tpu.core_type<tc>} {
    %c0 = arith.constant 0 : index
    %c0_0 = arith.constant 0 : index
    %0 = vector.load %arg0[%c0, %c0_0] : memref<2x32xf32, #tpu.memory_space<vmem>>, vector<2x32xf32>
    %c0_1 = arith.constant 0 : index
    %c0_2 = arith.constant 0 : index
    %1 = vector.load %arg1[%c0_1, %c0_2] : memref<32x32xf32, #tpu.memory_space<vmem>>, vector<32x32xf32>
    %cst = arith.constant dense<0.000000e+00> : vector<2x32xf32>
    %2 = tpu.matmul %0, %1, %cst {dimension_numbers = #tpu.dot_dimension_numbers<[1], [0], [0], [1], [0, 0, 1, 1], [], []>} : vector<2x32xf32>, vector<32x32xf32>, vector<2x32xf32> -> vector<2x32xf32>
    %c0_3 = arith.constant 0 : index
    %c0_4 = arith.constant 0 : index
    %3 = vector.load %arg2[%c0_3, %c0_4] : memref<1x32xf32, #tpu.memory_space<vmem>>, vector<1x32xf32>
    %4 = vector.broadcast %3 : vector<1x32xf32> to vector<2x32xf32>
    %5 = arith.addf %2, %4 : vector<2x32xf32>
    %cst_5 = arith.constant 2.000000e-01 : f32
    %6 = vector.broadcast %cst_5 : f32 to vector<2x32xf32>
    %7 = arith.mulf %6, %5 : vector<2x32xf32>
    %8 = arith.maximumf %5, %7 : vector<2x32xf32>
    %c0_6 = arith.constant 0 : index
    %c0_7 = arith.constant 0 : index
    %9 = vector.load %arg3[%c0_6, %c0_7] : memref<32x128xf32, #tpu.memory_space<vmem>>, vector<32x128xf32>
    %cst_8 = arith.constant dense<0.000000e+00> : vector<2x128xf32>
    %10 = tpu.matmul %8, %9, %cst_8 {dimension_numbers = #tpu.dot_dimension_numbers<[1], [0], [0], [1], [0, 0, 1, 1], [], []>} : vector<2x32xf32>, vector<32x128xf32>, vector<2x128xf32> -> vector<2x128xf32>
    %c0_9 = arith.constant 0 : index
    %c0_10 = arith.constant 0 : index
    %11 = vector.load %arg4[%c0_9, %c0_10] : memref<1x128xf32, #tpu.memory_space<vmem>>, vector<1x128xf32>
    %12 = vector.broadcast %11 : vector<1x128xf32> to vector<2x128xf32>
    %13 = arith.addf %10, %12 : vector<2x128xf32>
    %c0_11 = arith.constant 0 : index
    %c0_12 = arith.constant 0 : index
    %14 = vector.load %arg5[%c0_11, %c0_12] : memref<2x128xf32, #tpu.memory_space<vmem>>, vector<2x128xf32>
    tpu.vector_store %arg5[%c0_11, %c0_12], %13 {strides = array<i32>} : memref<2x128xf32, #tpu.memory_space<vmem>>, vector<2x128xf32>,
    return
  }
}

</mosaic_0001>

<bundles_post_ra>
// kernel: tpu_custom_call.1
= control target key start
LH: loop header
LB: loop body
LE: loop exit
PB: predicated region body
PF: predicated region fallthrough
CT: control target
= control target key end

     0   :  { %10 = vsyncpa [#allocation3], 0  ;;  %s501_s0 = inlined_call_operand.hbm [shape: f32[2,32], index: 0, kind: input, shape index: {}]   ;;  %s502_s1 = inlined_call_operand.hbm [shape: f32[32,32], index: 1, kind: input, shape index: {}]   ;;  %s503_s2 = inlined_call_operand.vmem [shape: f32[1,32], index: 2, kind: input, shape index: {}]   ;;  %s504_s3 = inlined_call_operand.hbm [shape: f32[32,128], index: 3, kind: input, shape index: {}]   ;;  %s505_s4 = inlined_call_operand.vmem [shape: f32[1,128], index: 4, kind: input, shape index: {}]   ;;  %s506_s5 = inlined_call_operand.hbm [shape: f32[2,128], index: 5, kind: output, shape index: {}]  }
   0x1   :  { %11 = vsyncpa [#allocation6], 0 }
   0x2   :  { %12 = vsyncpa [#allocation4], 0  ;;  %s400_s18 = smov [#allocation5]   ;;  %s306_s22 = scalar_lea.hbm %s502_s1, 512 }
   0x3   :  { %s28_s19 = sshll.u32 %s400_s18, 4  ;;  %p307_p0 = scmp.ne.s32.totalorder %s502_s1, %s306_s22  ;;  %s29_s19 = int_to_ptr.vmem [resolvable:$true] %s28_s19 }
   0x4   :  { %p310_p1 = scmp.lt.u32.totalorder %s306_s22, %s502_s1 }
   0x6   :  { %p312_p2 = pnand %p310_p1, %p307_p0 }
   0x8   :  { %315 = shalt.err (!%p312_p2)
}
   0x9   :  { %s316_s27 = scalar_lea.vmem %s29_s19, 512  ;;  %p321_p4 = scmp.lt.s32.totalorder %s29_s19, %s29_s19 }
   0xa   :  { %p317_p3 = scmp.ne.s32.totalorder %s29_s19, %s316_s27  ;;  %p322_p5 = scmp.lt.s32.totalorder %s316_s27, %s316_s27 }
   0xc   :  { %p323_p6 = por %p322_p5, %p321_p4 }
   0xe   :  { %p324_p7 = pnand %p323_p6, %p317_p3 }
  0x10   :  { %327 = shalt.err (!%p324_p7)
}
  0x11   :  { %s401_s28 = smov 128   ;;  %s402_s29 = smov 8  }
  0x12   :  { %34 = dma.hbm_to_vmem [thread:$0]  %s502_s1, 512, %s29_s19, [#allocation6], %s401_s28, %s401_s28, %s402_s29  }
  0x13   :  { %s403_s7 = smov [#allocation2]   ;;  %s404_s9 = smov [#allocation7]  }
  0x14   :  { %s19_s8 = sshll.u32 %s403_s7, 4  ;;  %s42_s10 = sshll.u32 %s404_s9, 4  ;;  %s20_s8 = int_to_ptr.vmem [resolvable:$true] %s19_s8  ;;  %s43_s10 = int_to_ptr.vmem [resolvable:$true] %s42_s10 }
  0x15   :  { %s328_s13 = scalar_lea.hbm %s501_s0, 32 }
  0x16   :  { %p329_p8 = scmp.ne.s32.totalorder %s501_s0, %s328_s13  ;;  %p332_p9 = scmp.lt.u32.totalorder %s328_s13, %s501_s0 }
  0x18   :  { %p334_p10 = pnand %p332_p9, %p329_p8 }
  0x1a   :  { %337 = shalt.err (!%p334_p10)
}
  0x1b   :  { %s338_s1 = scalar_lea.vmem %s20_s8, 32  ;;  %p343_p12 = scmp.lt.s32.totalorder %s20_s8, %s20_s8 }
  0x1c   :  { %p339_p11 = scmp.ne.s32.totalorder %s20_s8, %s338_s1  ;;  %p344_p13 = scmp.lt.s32.totalorder %s338_s1, %s338_s1 }
  0x1e   :  { %p345_p0 = por %p344_p13, %p343_p12 }
  0x20   :  { %p346_p1 = pnand %p345_p0, %p339_p11 }
  0x22   :  { %349 = shalt.err (!%p346_p1)
}
  0x23   :  { %22 = dma.hbm_to_vmem [thread:$0]  %s501_s0, 32, %s20_s8, [#allocation3]  }
  0x24   :  { %s350_s22 = scalar_lea.hbm %s504_s3, 512 }
  0x25   :  { %p351_p2 = scmp.ne.s32.totalorder %s504_s3, %s350_s22  ;;  %p354_p3 = scmp.lt.u32.totalorder %s350_s22, %s504_s3 }
  0x27   :  { %p356_p4 = pnand %p354_p3, %p351_p2 }
  0x29   :  { %359 = shalt.err (!%p356_p4)
}
  0x2a   :  { %s360_s27 = scalar_lea.vmem %s43_s10, 512  ;;  %p365_p6 = scmp.lt.s32.totalorder %s43_s10, %s43_s10 }
  0x2b   :  { %p361_p5 = scmp.ne.s32.totalorder %s43_s10, %s360_s27  ;;  %p366_p7 = scmp.lt.s32.totalorder %s360_s27, %s360_s27 }
  0x2d   :  { %p367_p8 = por %p366_p7, %p365_p6 }
  0x2f   :  { %p368_p9 = pnand %p367_p8, %p361_p5 }
  0x31   :  { %371 = shalt.err (!%p368_p9)
}
  0x32   :  { %48 = dma.hbm_to_vmem [thread:$0]  %s504_s3, 512, %s43_s10, [#allocation6], %s401_s28, %s401_s28, %s402_s29  }
  0x33   :  { %394 = dma.done.wait [#allocation3], 32  }
  0x34   :  { %395 = vsyncadd [#allocation3], 4294967264 }
  0x35   :  { %396 = dma.done.wait [#allocation6], 1024  }
  0x36   :  { %397 = vsyncadd [#allocation6], 4294966272  ;;  %v405_v0 = vmov 0.0|0.0   ;;  %vm406_vm0 = vmmov 0   ;;  %v407_v1 = vmov 0.0   ;;  %v61_v2 = vld [vmem:[#allocation5] sm:$0xff] }
  0x37   :  { %285 = vmatprep.subr.bf16.mxu0 %v405_v0  ;;  %271 = vmatprep.mubr.msk.f32.mxu0 %vm406_vm0, %v407_v1  ;;  %v62_v3 = vld [vmem:[#allocation5 + $0x8] sm:$0xff]  ;;  %v63_v4 = vld [vmem:[#allocation5 + $0x10] sm:$0xff]  ;;  %v64_v6 = vld [vmem:[#allocation5 + $0x18] sm:$0xff]  ;;  %vm72_vm1 = vcmask 261120   ;;  %s408_s7 = smov [#allocation8]  }
  0x38   :  { %291 = vmatprep.subr.bf16.mxu1 %v405_v0  ;;  %282 = vmatprep.mubr.msk.f32.mxu1 %vm406_vm0, %v407_v1  ;;  %v286_v5 = vpack.c.bf16 %v62_v3, %v61_v2  ;;  %v289_v7 = vpack.c.bf16 %v64_v6, %v63_v4  ;;  %v60_v8 = vld [vmem:[#allocation2] sm:$0x3]  ;;  %v148_v9 = vld [vmem:[#allocation7] sm:$0xff]  ;;  %v149_v10 = vld [vmem:[#allocation7 + $0x8] sm:$0xff]  ;;  %s239_s8 = sshll.u32 %s408_s7, 4  ;;  %s240_s8 = int_to_ptr.vmem [resolvable:$true] %s239_s8 }
  0x39   :  { %v292_v11 = vpack.c.bf16 %v149_v10, %v148_v9  ;;  %v150_v12 = vld [vmem:[#allocation7 + $0x10] sm:$0xff]  ;;  %v151_v13 = vld [vmem:[#allocation7 + $0x18] sm:$0xff]  ;;  %s372_s9 = scalar_lea.vmem %s240_s8, 32  ;;  %p377_p11 = scmp.lt.s32.totalorder %s240_s8, %s240_s8 }
  0x3a   :  { %287 = vmatpush3.bf16.msra.mxu0 %v286_v5  ;;  %v295_v14 = vpack.c.bf16 %v151_v13, %v150_v12  ;;  %v249_v15 = vld [vmem:[%s503_s2] ss:$0 sm:$0xff]  ;;  %p373_p10 = scmp.ne.s32.totalorder %s240_s8, %s372_s9  ;;  %p378_p12 = scmp.lt.s32.totalorder %s372_s9, %s372_s9 }
  0x3b   :  { %288 = vmatprep.subr.bf16.mxu0 %v405_v0  ;;  %293 = vmatpush3.bf16.msra.mxu1 %v292_v11  ;;  %v251_v21 = vld [vmem:[%s505_s4] ss:$0 sm:$0xff] }
  0x3c   :  { %294 = vmatprep.subr.bf16.mxu1 %v405_v0  ;;  %p379_p13 = por %p378_p12, %p377_p11 }
  0x3e   :  { %290 = vmatpush3.bf16.msra.mxu0 %v289_v7  ;;  %p380_p0 = pnand %p379_p13, %p373_p10 }
  0x3f   :  { %296 = vmatpush3.bf16.msra.mxu1 %v295_v14 }
  0x41   :  { %272 = vmatmul.mubr.msk.f32.vlgmr.msra.gmra.mrb[0].mxu0 %vm72_vm1, %v60_v8 }
 0x114   :  { %v142_v16 = vpop.f32.mrb[0].mxu0 }
 0x115   :  { %v143_v17 = vadd.f32 %v249_v15, %v142_v16  ;;  %v273_v18 = vpop.f32.mrb[1].mxu0 }
 0x117   :  { %v146_v19 = vmul.f32 0.2, %v143_v17 }
 0x119   :  { %v147_v20 = vmax.f32 %v143_v17, %v146_v19 }
 0x11b   :  { %283 = vmatmul.mubr.msk.f32.vlgmr.msra.gmra.mrb[0].mxu1 %vm72_vm1, %v147_v20 }
 0x1ee   :  { %v228_v22 = vpop.f32.mrb[0].mxu1 }
 0x1ef   :  { %v229_v23 = vadd.f32 %v251_v21, %v228_v22  ;;  %v284_v24 = vpop.f32.mrb[1].mxu1 }
 0x1f1   :  { %232 = vst [vmem:[#allocation8] sm:$0x3] %v229_v23 }
 0x1f2   :  { %383 = shalt.err (!%p380_p0)
}
 0x1f3   :  { %s384_s11 = scalar_lea.hbm %s506_s5, 32 }
 0x1f4   :  { %p385_p1 = scmp.ne.s32.totalorder %s506_s5, %s384_s11  ;;  %p388_p2 = scmp.lt.u32.totalorder %s384_s11, %s506_s5 }
 0x1f6   :  { %p390_p3 = pnand %p388_p2, %p385_p1 }
 0x1f8   :  { %393 = shalt.err (!%p390_p3)
}
 0x1f9   :  { %242 = dma.vmem_to_hbm [thread:$0]  %s240_s8, 32, %s506_s5, [#allocation4]  }
 0x1fa   :  { %398 = dma.done.wait [#allocation4], 32  }
 0x1fb   :  { %399 = vsyncadd [#allocation4], 4294967264 }
 0x1fc   :  { %246 = vsyncpa [#allocation3], 1 }
 0x1fd   :  { %247 = vsyncpa [#allocation6], 1 }
 0x1fe   :  { %248 = vsyncpa [#allocation4], 1 }

</bundles_post_ra>
